<compile_context>
chip_gen: v7x
topology: tpu7x:2x2x1
jax: 0.10.0
libtpu: 0.0.40
codegen_flags: <defaults>
</compile_context>

<pallas_src>
import functools

import jax
import jax.numpy as jnp
from jax.experimental import pallas as pl
from jax.experimental.pallas import tpu as pltpu

IN_DIM = 35
OUT_DIM = 5


def dqn_kernel(x_ref, w_ref, b_ref, o_ref):
    # x:(TM,35)  w:(35,5)  b:(1,5)  ->  o:(TM,5)
    y = jnp.dot(x_ref[...], w_ref[...], preferred_element_type=jnp.float32)
    o_ref[...] = (y + b_ref[...]).astype(o_ref.dtype)


def _round_up(x, m):
    return (x + m - 1) // m * m


@functools.partial(jax.jit, static_argnames=("tile_m",))
def dqn_forward(s, w1, b1, w2, b2, *, tile_m=1024):
    """s: (B, 35) or (B, 1, 35). Returns (B, 1, 5), matching PyTorch DQNNet."""
    s = jnp.asarray(s, jnp.float32)
    B = s.shape[0]
    x = s.reshape(B, IN_DIM)

    # Affine(Affine(x)) == Affine(x): legal because DQNNet has no activation
    # between the two Linear layers.
    w_eff = (w1 @ w2).astype(jnp.float32)                          # (35, 5)
    b_eff = (b1 @ w2 + b2).reshape(1, OUT_DIM).astype(jnp.float32)  # (1, 5)

    tm = min(tile_m, _round_up(B, 8))   # row tile, always a multiple of 8
    grid = (pl.cdiv(B, tm),)            # ragged last block handled by Pallas

    out = pl.pallas_call(
        dqn_kernel,
        out_shape=jax.ShapeDtypeStruct((B, OUT_DIM), jnp.float32),
        grid_spec=pltpu.PrefetchScalarGridSpec(
            num_scalar_prefetch=0,
            grid=grid,
            in_specs=[
                pl.BlockSpec((tm, IN_DIM), lambda i: (i, 0)),       # streamed
                pl.BlockSpec((IN_DIM, OUT_DIM), lambda i: (0, 0)),  # resident
                pl.BlockSpec((1, OUT_DIM), lambda i: (0, 0)),       # resident
            ],
            out_specs=pl.BlockSpec((tm, OUT_DIM), lambda i: (i, 0)),
        ),
        compiler_params=pltpu.CompilerParams(
            dimension_semantics=("parallel",),   # megacore split on v7x
        ),
    )(x, w_eff, b_eff)

    return out.reshape(B, 1, OUT_DIM)


def init_params(key):
    # Mimic nn.Linear default init: U(-1/sqrt(fan_in), 1/sqrt(fan_in)).
    k1, k2, k3, k4 = jax.random.split(key, 4)
    bound = 1.0 / jnp.sqrt(35.0)
    # Stored already transposed: (in, out) so the math is x @ W + b.
    w1 = jax.random.uniform(k1, (IN_DIM, IN_DIM), jnp.float32, -bound, bound)
    b1 = jax.random.uniform(k2, (IN_DIM,), jnp.float32, -bound, bound)
    w2 = jax.random.uniform(k3, (IN_DIM, OUT_DIM), jnp.float32, -bound, bound)
    b2 = jax.random.uniform(k4, (OUT_DIM,), jnp.float32, -bound, bound)
    return w1, b1, w2, b2


if __name__ == "__main__":
    key = jax.random.PRNGKey(0)
    pkey, xkey = jax.random.split(key)
    w1, b1, w2, b2 = init_params(pkey)

    def ref_forward(s):
        # Same math as the PyTorch module: two sequential affine layers.
        b = s.shape[0]
        xr = s.reshape(b, IN_DIM)
        return ((xr @ w1 + b1) @ w2 + b2).reshape(b, 1, OUT_DIM)

    # Small single-tile case (RL-style batch, matches the module's usage).
    s8 = jax.random.normal(jax.random.fold_in(xkey, 0), (8, 1, IN_DIM), jnp.float32)
    out8 = jax.block_until_ready(dqn_forward(s8, w1, b1, w2, b2))
    assert out8.shape == (8, 1, OUT_DIM)
    assert jnp.allclose(out8, ref_forward(s8), atol=1e-4, rtol=1e-5)

    # Multi-tile ragged case exercising the batch grid (B % tile != 0).
    s300 = jax.random.normal(jax.random.fold_in(xkey, 1), (300, 1, IN_DIM), jnp.float32)
    out300 = jax.block_until_ready(dqn_forward(s300, w1, b1, w2, b2, tile_m=128))
    assert out300.shape == (300, 1, OUT_DIM)
    assert jnp.allclose(out300, ref_forward(s300), atol=1e-4, rtol=1e-5)

    print("KERNEL_OK")
</pallas_src>

<mosaic_0001>
module attributes {stable_mosaic.version = 11 : i64} {
  func.func @dqn_kernel(%arg0: i32, %arg1: memref<8x35xf32, #tpu.memory_space<vmem>>, %arg2: memref<35x5xf32, #tpu.memory_space<vmem>>, %arg3: memref<1x5xf32, #tpu.memory_space<vmem>>, %arg4: memref<8x5xf32, #tpu.memory_space<vmem>>) attributes {dimension_semantics = [#tpu.dimension_semantics<parallel>], iteration_bounds = array<i64: 1>, scalar_prefetch = 0 : i64, scratch_operands = 0 : i64, tpu.core_type = #tpu.core_type<tc>, window_params = [{transform_indices = @transform_0, window_bounds = array<i64: 8, 35>}, {pipeline_mode = #tpu.pipeline_mode<synchronous>, transform_indices = @transform_1, window_bounds = array<i64: 35, 5>}, {pipeline_mode = #tpu.pipeline_mode<synchronous>, transform_indices = @transform_2, window_bounds = array<i64: 1, 5>}, {transform_indices = @transform_3, window_bounds = array<i64: 8, 5>}]} {
    %c0 = arith.constant 0 : index
    %c0_0 = arith.constant 0 : index
    %0 = vector.load %arg1[%c0, %c0_0] : memref<8x35xf32, #tpu.memory_space<vmem>>, vector<8x35xf32>
    %c0_1 = arith.constant 0 : index
    %c0_2 = arith.constant 0 : index
    %1 = vector.load %arg2[%c0_1, %c0_2] : memref<35x5xf32, #tpu.memory_space<vmem>>, vector<35x5xf32>
    %cst = arith.constant dense<0.000000e+00> : vector<8x5xf32>
    %2 = tpu.matmul %0, %1, %cst {dimension_numbers = #tpu.dot_dimension_numbers<[1], [0], [0], [1], [0, 0, 1, 1], [], []>} : vector<8x35xf32>, vector<35x5xf32>, vector<8x5xf32> -> vector<8x5xf32>
    %c0_3 = arith.constant 0 : index
    %c0_4 = arith.constant 0 : index
    %3 = vector.load %arg3[%c0_3, %c0_4] : memref<1x5xf32, #tpu.memory_space<vmem>>, vector<1x5xf32>
    %4 = vector.broadcast %3 : vector<1x5xf32> to vector<8x5xf32>
    %5 = arith.addf %2, %4 : vector<8x5xf32>
    %c0_5 = arith.constant 0 : index
    %c0_6 = arith.constant 0 : index
    %6 = vector.load %arg4[%c0_5, %c0_6] : memref<8x5xf32, #tpu.memory_space<vmem>>, vector<8x5xf32>
    tpu.vector_store %arg4[%c0_5, %c0_6], %5 {strides = array<i32>} : memref<8x5xf32, #tpu.memory_space<vmem>>, vector<8x5xf32>,
    return
  }
  func.func @transform_0(%arg0: i32) -> (i32, i32) {
    %c0_i32 = arith.constant 0 : i32
    %c0_i32_0 = arith.constant 0 : i32
    return %arg0, %c0_i32 : i32, i32
  }
  func.func @transform_1(%arg0: i32) -> (i32, i32) {
    %c0_i32 = arith.constant 0 : i32
    %c0_i32_0 = arith.constant 0 : i32
    %c0_i32_1 = arith.constant 0 : i32
    return %c0_i32, %c0_i32_0 : i32, i32
  }
  func.func @transform_2(%arg0: i32) -> (i32, i32) {
    %c0_i32 = arith.constant 0 : i32
    %c0_i32_0 = arith.constant 0 : i32
    %c0_i32_1 = arith.constant 0 : i32
    return %c0_i32, %c0_i32_0 : i32, i32
  }
  func.func @transform_3(%arg0: i32) -> (i32, i32) {
    %c0_i32 = arith.constant 0 : i32
    %c0_i32_0 = arith.constant 0 : i32
    return %arg0, %c0_i32 : i32, i32
  }
}

</mosaic_0001>

<bundles_post_ra>
// kernel: dqn_forward.1
= control target key start
LH: loop header
LB: loop body
LE: loop exit
PB: predicated region body
PF: predicated region fallthrough
CT: control target
= control target key end

     0   :  { %v142_v0 = vmov 0.0|0.0   ;;  %vm143_vm0 = vmmov 0   ;;  %v144_v4 = vmov 0.0   ;;  %vm31_vm1 = vcmask 1042432   ;;  %s189_s1 = inlined_call_operand.vmem [shape: f32[35,5], index: 1, kind: input, shape index: {}]   ;;  %s190_s0 = inlined_call_operand.vmem [shape: f32[8,35], index: 0, kind: input, shape index: {}]   ;;  %s191_s2 = inlined_call_operand.vmem [shape: f32[1,5], index: 2, kind: input, shape index: {}]   ;;  %s192_s3 = inlined_call_operand.vmem [shape: f32[8,5], index: 3, kind: output, shape index: {}]  }
   0x1   :  { %133 = vmatprep.subr.bf16.mxu0 %v142_v0  ;;  %v15_v1 = vld [vmem:[%s189_s1] sm:$0xff]  ;;  %v16_v2 = vld [vmem:[%s189_s1 + $0x8] sm:$0xff]  ;;  %v17_v3 = vld [vmem:[%s189_s1 + $0x10] sm:$0xff]  ;;  %130 = vmatprep.mubr.msk.f32.mxu0 %vm143_vm0, %v144_v4  ;;  %vm27_vm2 = vcmask 285696   ;;  %vm105_vm3 = vcmask 39936  }
   0x2   :  { %v134_v5 = vpack.c.bf16 %v16_v2, %v15_v1  ;;  %v18_v6 = vld [vmem:[%s189_s1 + $0x18] sm:$0xff]  ;;  %v19_v8 = vld [vmem:[%s189_s1 + $0x20] sm:$0x7] }
   0x3   :  { %v137_v7 = vpack.c.bf16 %v18_v6, %v17_v3  ;;  %v14_v9 = vld [vmem:[%s190_s0] sm:$0xff] }
   0x4   :  { %135 = vmatpush3.bf16.msra.mxu0 %v134_v5  ;;  %v111_v10 = vld [vmem:[%s191_s2] ss:$0 sm:$0xff] }
   0x5   :  { %136 = vmatprep.subr.bf16.mxu0 %v142_v0 }
   0x8   :  { %138 = vmatpush3.bf16.msra.mxu0 %v137_v7 }
   0x9   :  { %128 = vmatprep.subr.mxu0 %v144_v4 }
   0xc   :  { %129 = vmatpush3.msk.msra.mxu0 %vm31_vm1, %v19_v8 }
   0xd   :  { %131 = vmatmul.mubr.msk.f32.vlgmr.msra.gmra.mrb[0].mxu0 %vm27_vm2, %v14_v9 }
  0xe0   :  { %v101_v11 = vpop.f32.mrb[0].mxu0 }
  0xe1   :  { %v102_v12 = vadd.f32 %v111_v10, %v101_v11  ;;  %v132_v13 = vpop.f32.mrb[1].mxu0 }
  0xe3   :  { %106 = vst.msk [vmem:[%s192_s3] sm:$0xff] %vm105_vm3, %v102_v12 }

</bundles_post_ra>
